<compile_context>
chip_gen: v5e
topology: v5e:2x2
jax: 0.10.0
libtpu: 0.0.40
codegen_flags: <defaults>
</compile_context>

<pallas_src>
import functools

import jax
import jax.numpy as jnp
from jax import lax
from jax.experimental import pallas as pl
from jax.experimental.pallas import tpu as pltpu

LANES = 128
ACC_ROWS = 64              # resident accumulator rows per parallel block


def _round_up(x, m):
    return ((x + m - 1) // m) * m


def _device_kind():
    try:
        return jax.devices()[0].device_kind.lower()
    except Exception:  # pragma: no cover - defensive (e.g. interpret mode)
        return ""


def _default_tile_rows():
    kind = _device_kind()
    if "v7" in kind:
        return 8192        # 16 MiB double-buffered f32 inputs; << 64 MiB VMEM/TC
    if "v5" in kind:
        return 4096        # stays comfortably inside v5e's smaller scoped VMEM
    return 8192            # v6e and newer single-TC parts


def _default_num_parallel():
    # Dual-TensorCore parts benefit from splitting the stream; single-TC parts
    # just pay extra grid padding for tiny inputs.
    return 2 if "v7" in _device_kind() else 1


def _bpr_partial_kernel(pos_ref, neg_ref, out_ref, *, total_elems, tile_rows):
    p = pl.program_id(0)            # parallel block
    s = pl.program_id(1)            # reduction step within block
    n_s = pl.num_programs(1)

    @pl.when(s == 0)
    def _():
        out_ref[...] = jnp.zeros_like(out_ref)

    # native-dtype load, f32 math in-register
    diff = neg_ref[...].astype(jnp.float32) - pos_ref[...].astype(jnp.float32)
    # numerically stable softplus: max/abs/select on VPU, exp/log1p on EUP
    sp = jnp.maximum(diff, 0.0) + jnp.log1p(jnp.exp(-jnp.abs(diff)))

    def _fold(x):
        # (tile_rows, 128) -> (ACC_ROWS, 128): split along vreg boundaries,
        # tile_rows//ACC_ROWS dependent adds over 8 independent vreg chains.
        return x.reshape(tile_rows // ACC_ROWS, ACC_ROWS, LANES).sum(axis=0)

    # Grid-coordinate-based boundary detection (int32; fine for n < 2**31).
    row0 = (p * n_s + s) * tile_rows
    needs_mask = (row0 + tile_rows) * LANES > total_elems

    @pl.when(jnp.logical_not(needs_mask))
    def _():
        # Interior tile: fully valid, mask-free fast path.
        out_ref[...] += _fold(sp)

    @pl.when(needs_mask)
    def _():
        # Boundary / fully-out-of-range tile: discard padded / garbage lanes
        # (softplus(0)=ln 2 or NaN/Inf from ragged-edge garbage would
        # otherwise corrupt the mean).  Mask is grid-based, never data-based.
        row_ids = lax.broadcasted_iota(jnp.int32, (tile_rows, LANES), 0) + row0
        lane_ids = lax.broadcasted_iota(jnp.int32, (tile_rows, LANES), 1)
        valid = (row_ids * LANES + lane_ids) < total_elems
        out_ref[...] += _fold(jnp.where(valid, sp, 0.0))


def drug_repurposing_loss(pos_scores, neg_scores, *,
                          tile_rows=None, num_parallel=None):
    """BPR ranking loss: mean(softplus(neg - pos)), reduced in a Pallas kernel."""
    assert pos_scores.shape == neg_scores.shape
    assert pos_scores.ndim == 1
    n = int(pos_scores.shape[0])
    assert n > 0

    if tile_rows is None:
        tile_rows = _default_tile_rows()
    if num_parallel is None:
        num_parallel = _default_num_parallel()

    itemsize = jnp.dtype(pos_scores.dtype).itemsize

    # Only pad to the next multiple of 128 lanes (skipped when aligned) —
    # never to the full tile grid, so we avoid re-materializing the inputs.
    rows = pl.cdiv(n, LANES)
    pad = rows * LANES - n
    if pad:
        pos_scores = jnp.pad(pos_scores, (0, pad))
        neg_scores = jnp.pad(neg_scores, (0, pad))
    pos2 = pos_scores.reshape(rows, LANES)
    neg2 = neg_scores.reshape(rows, LANES)

    # Shrink the tile for tiny inputs; keep it a multiple of ACC_ROWS so the
    # in-kernel fold splits cleanly along vreg boundaries.
    tr = min(tile_rows, _round_up(max(pl.cdiv(rows, num_parallel), 1), ACC_ROWS))
    tr = _round_up(max(tr, ACC_ROWS), ACC_ROWS)
    steps = max(1, pl.cdiv(rows, num_parallel * tr))

    # Clamp the block origin so no DMA starts past the array; logically
    # out-of-range grid points are zeroed by the grid-based mask anyway.
    last_blk = max(pl.cdiv(rows, tr) - 1, 0)

    def in_idx(p, s):
        return (jnp.minimum(p * steps + s, last_blk), 0)

    kernel = functools.partial(_bpr_partial_kernel, total_elems=n, tile_rows=tr)

    # 2 inputs x 2 pipeline buffers x (tr,128) blocks + double-buffered output.
    vmem_needed = 4 * tr * LANES * itemsize + 2 * ACC_ROWS * LANES * 4
    vmem_limit = int(min(max(vmem_needed + (8 << 20), 16 << 20), 56 << 20))

    partials = pl.pallas_call(
        kernel,
        out_shape=jax.ShapeDtypeStruct((num_parallel * ACC_ROWS, LANES),
                                       jnp.float32),
        grid=(num_parallel, steps),
        in_specs=[
            pl.BlockSpec((tr, LANES), in_idx),
            pl.BlockSpec((tr, LANES), in_idx),
        ],
        out_specs=pl.BlockSpec((ACC_ROWS, LANES), lambda p, s: (p, 0)),
        compiler_params=pltpu.CompilerParams(
            dimension_semantics=("parallel", "arbitrary"),
            vmem_limit_bytes=vmem_limit),
    )(pos2, neg2)

    # single final tree-reduce of the lane-dense partials + mean
    return jnp.sum(partials) / jnp.float32(n)


if __name__ == "__main__":
    key = jax.random.PRNGKey(0)
    k_pos, k_neg = jax.random.split(key)

    # small deterministic inputs
    num_pairs = 2048
    pos_scores = jax.random.normal(k_pos, (num_pairs,), dtype=jnp.float32)
    neg_scores = jax.random.normal(k_neg, (num_pairs,), dtype=jnp.float32)

    # case 1: f32, 128-aligned
    loss = jax.block_until_ready(drug_repurposing_loss(pos_scores, neg_scores))
    ref = jnp.mean(jax.nn.softplus(neg_scores - pos_scores))
    assert jnp.allclose(loss, ref, atol=1e-5, rtol=1e-5), (loss, ref)

    # case 2: f32, num_pairs NOT a multiple of 128 -> exercises boundary mask
    n2 = 2000
    loss2 = jax.block_until_ready(
        drug_repurposing_loss(pos_scores[:n2], neg_scores[:n2]))
    ref2 = jnp.mean(jax.nn.softplus(neg_scores[:n2] - pos_scores[:n2]))
    assert jnp.allclose(loss2, ref2, atol=1e-5, rtol=1e-5), (loss2, ref2)

    # case 3: native bf16 scores (no wrapper upcast; kernel casts in-register)
    pos_bf = pos_scores.astype(jnp.bfloat16)
    neg_bf = neg_scores.astype(jnp.bfloat16)
    loss3 = jax.block_until_ready(drug_repurposing_loss(pos_bf, neg_bf))
    ref3 = jnp.mean(jax.nn.softplus(
        neg_bf.astype(jnp.float32) - pos_bf.astype(jnp.float32)))
    assert jnp.allclose(loss3, ref3, atol=2e-3, rtol=2e-3), (loss3, ref3)

    # case 4: tiny ragged input (rows < one tile, exercises clamp + full mask)
    n4 = 77
    loss4 = jax.block_until_ready(
        drug_repurposing_loss(pos_scores[:n4], neg_scores[:n4]))
    ref4 = jnp.mean(jax.nn.softplus(neg_scores[:n4] - pos_scores[:n4]))
    assert jnp.allclose(loss4, ref4, atol=1e-5, rtol=1e-5), (loss4, ref4)

    print("KERNEL_OK")
</pallas_src>

<mosaic_0001>
module attributes {stable_mosaic.version = 11 : i64} {
  func.func @_bpr_partial_kernel(%arg0: i32, %arg1: i32, %arg2: memref<64x128xf32, #tpu.memory_space<vmem>>, %arg3: memref<64x128xf32, #tpu.memory_space<vmem>>, %arg4: memref<64x128xf32, #tpu.memory_space<vmem>>) attributes {dimension_semantics = [#tpu.dimension_semantics<parallel>, #tpu.dimension_semantics<arbitrary>], iteration_bounds = array<i64: 1, 1>, scalar_prefetch = 0 : i64, scratch_operands = 0 : i64, tpu.core_type = #tpu.core_type<tc>, window_params = [{transform_indices = @transform_0, window_bounds = array<i64: 64, 128>}, {transform_indices = @transform_1, window_bounds = array<i64: 64, 128>}, {transform_indices = @transform_2, window_bounds = array<i64: 64, 128>}]} {
    %c0_i32 = arith.constant 0 : i32
    %0 = arith.cmpi eq, %arg1, %c0_i32 : i32
    %1 = arith.extui %0 : i1 to i32
    %c0_i32_0 = arith.constant 0 : i32
    %2 = arith.cmpi ne, %1, %c0_i32_0 : i32
    scf.if %2 {
      %cst_8 = arith.constant 0.000000e+00 : f32
      %25 = vector.broadcast %cst_8 : f32 to vector<64x128xf32>
      %c0_9 = arith.constant 0 : index
      %c0_10 = arith.constant 0 : index
      %26 = vector.load %arg4[%c0_9, %c0_10] : memref<64x128xf32, #tpu.memory_space<vmem>>, vector<64x128xf32>
      tpu.vector_store %arg4[%c0_9, %c0_10], %25 {strides = array<i32>} : memref<64x128xf32, #tpu.memory_space<vmem>>, vector<64x128xf32>,
    } else {
    }
    %c0 = arith.constant 0 : index
    %c0_1 = arith.constant 0 : index
    %3 = vector.load %arg3[%c0, %c0_1] : memref<64x128xf32, #tpu.memory_space<vmem>>, vector<64x128xf32>
    %c0_2 = arith.constant 0 : index
    %c0_3 = arith.constant 0 : index
    %4 = vector.load %arg2[%c0_2, %c0_3] : memref<64x128xf32, #tpu.memory_space<vmem>>, vector<64x128xf32>
    %5 = arith.subf %3, %4 : vector<64x128xf32>
    %cst = arith.constant 0.000000e+00 : f32
    %6 = vector.broadcast %cst : f32 to vector<64x128xf32>
    %7 = arith.maximumf %5, %6 : vector<64x128xf32>
    %8 = math.absf %5 : vector<64x128xf32>
    %cst_4 = arith.constant 0.000000e+00 : f32
    %9 = vector.broadcast %cst_4 : f32 to vector<64x128xf32>
    %10 = arith.subf %9, %8 : vector<64x128xf32>
    %11 = math.exp %10 : vector<64x128xf32>
    %12 = math.log1p %11 : vector<64x128xf32>
    %13 = arith.addf %7, %12 : vector<64x128xf32>
    %c1_i32 = arith.constant 1 : i32
    %14 = arith.muli %arg0, %c1_i32 : i32
    %15 = arith.addi %14, %arg1 : i32
    %c64_i32 = arith.constant 64 : i32
    %16 = arith.muli %15, %c64_i32 : i32
    %c64_i32_5 = arith.constant 64 : i32
    %17 = arith.addi %16, %c64_i32_5 : i32
    %c128_i32 = arith.constant 128 : i32
    %18 = arith.muli %17, %c128_i32 : i32
    %c2048_i32 = arith.constant 2048 : i32
    %19 = arith.cmpi sgt, %18, %c2048_i32 : i32
    %true = arith.constant true
    %20 = arith.xori %19, %true : i1
    %21 = arith.extui %20 : i1 to i32
    %c0_i32_6 = arith.constant 0 : i32
    %22 = arith.cmpi ne, %21, %c0_i32_6 : i32
    scf.if %22 {
      %c0_8 = arith.constant 0 : index
      %c0_9 = arith.constant 0 : index
      %25 = vector.load %arg4[%c0_8, %c0_9] : memref<64x128xf32, #tpu.memory_space<vmem>>, vector<64x128xf32>
      %26 = vector.shape_cast %13 : vector<64x128xf32> to vector<1x64x128xf32>
      %cst_10 = arith.constant dense<0.000000e+00> : vector<64x128xf32>
      %27 = vector.multi_reduction <add>, %26, %cst_10 [0] : vector<1x64x128xf32> to vector<64x128xf32>
      %28 = arith.addf %25, %27 : vector<64x128xf32>
      %c0_11 = arith.constant 0 : index
      %c0_12 = arith.constant 0 : index
      %29 = vector.load %arg4[%c0_11, %c0_12] : memref<64x128xf32, #tpu.memory_space<vmem>>, vector<64x128xf32>
      tpu.vector_store %arg4[%c0_11, %c0_12], %28 {strides = array<i32>} : memref<64x128xf32, #tpu.memory_space<vmem>>, vector<64x128xf32>,
    } else {
    }
    %23 = arith.extui %19 : i1 to i32
    %c0_i32_7 = arith.constant 0 : i32
    %24 = arith.cmpi ne, %23, %c0_i32_7 : i32
    scf.if %24 {
      %25 = tpu.iota {dimensions = array<i32: 0>} : vector<64x128xi32>
      %26 = vector.broadcast %16 : i32 to vector<64x128xi32>
      %27 = arith.addi %25, %26 : vector<64x128xi32>
      %28 = tpu.iota {dimensions = array<i32: 1>} : vector<64x128xi32>
      %c128_i32_8 = arith.constant 128 : i32
      %29 = vector.broadcast %c128_i32_8 : i32 to vector<64x128xi32>
      %30 = arith.muli %27, %29 : vector<64x128xi32>
      %31 = arith.addi %30, %28 : vector<64x128xi32>
      %c2048_i32_9 = arith.constant 2048 : i32
      %32 = vector.broadcast %c2048_i32_9 : i32 to vector<64x128xi32>
      %33 = arith.cmpi slt, %31, %32 : vector<64x128xi32>
      %c0_10 = arith.constant 0 : index
      %c0_11 = arith.constant 0 : index
      %34 = vector.load %arg4[%c0_10, %c0_11] : memref<64x128xf32, #tpu.memory_space<vmem>>, vector<64x128xf32>
      %cst_12 = arith.constant 0.000000e+00 : f32
      %35 = vector.broadcast %cst_12 : f32 to vector<64x128xf32>
      %36 = arith.select %33, %13, %35 : vector<64x128xi1>, vector<64x128xf32>
      %37 = vector.shape_cast %36 : vector<64x128xf32> to vector<1x64x128xf32>
      %cst_13 = arith.constant dense<0.000000e+00> : vector<64x128xf32>
      %38 = vector.multi_reduction <add>, %37, %cst_13 [0] : vector<1x64x128xf32> to vector<64x128xf32>
      %39 = arith.addf %34, %38 : vector<64x128xf32>
      %c0_14 = arith.constant 0 : index
      %c0_15 = arith.constant 0 : index
      %40 = vector.load %arg4[%c0_14, %c0_15] : memref<64x128xf32, #tpu.memory_space<vmem>>, vector<64x128xf32>
      tpu.vector_store %arg4[%c0_14, %c0_15], %39 {strides = array<i32>} : memref<64x128xf32, #tpu.memory_space<vmem>>, vector<64x128xf32>,
    } else {
    }
    return
  }
  func.func @transform_0(%arg0: i32, %arg1: i32) -> (i32, i32) {
    %c1_i32 = arith.constant 1 : i32
    %0 = arith.muli %arg0, %c1_i32 : i32
    %1 = arith.addi %0, %arg1 : i32
    %c0_i32 = arith.constant 0 : i32
    %2 = arith.minsi %1, %c0_i32 : i32
    %c0_i32_0 = arith.constant 0 : i32
    %c0_i32_1 = arith.constant 0 : i32
    return %2, %c0_i32_0 : i32, i32
  }
  func.func @transform_1(%arg0: i32, %arg1: i32) -> (i32, i32) {
    %c1_i32 = arith.constant 1 : i32
    %0 = arith.muli %arg0, %c1_i32 : i32
    %1 = arith.addi %0, %arg1 : i32
    %c0_i32 = arith.constant 0 : i32
    %2 = arith.minsi %1, %c0_i32 : i32
    %c0_i32_0 = arith.constant 0 : i32
    %c0_i32_1 = arith.constant 0 : i32
    return %2, %c0_i32_0 : i32, i32
  }
  func.func @transform_2(%arg0: i32, %arg1: i32) -> (i32, i32) {
    %c0_i32 = arith.constant 0 : i32
    %c0_i32_0 = arith.constant 0 : i32
    return %arg0, %c0_i32 : i32, i32
  }
}

</mosaic_0001>

<bundles_post_ra>
// kernel: tpu_custom_call.1
= control target key start
LH: loop header
LB: loop body
LE: loop exit
PB: predicated region body
PF: predicated region fallthrough
CT: control target
= control target key end

     0   :  { %7 = vsyncpa [#allocation3], 0  ;;  %s677_s0 = inlined_call_operand.hbm [shape: f32[16,128], index: 0, kind: input, shape index: {}]   ;;  %s678_s1 = inlined_call_operand.hbm [shape: f32[16,128], index: 1, kind: input, shape index: {}]   ;;  %s679_s2 = inlined_call_operand.hbm [shape: f32[64,128], index: 2, kind: output, shape index: {}]  }
   0x1   :  { %8 = vsyncpa [#allocation6], 0 }
   0x2   :  { %9 = vsyncpa [#allocation4], 0 }
   0x3   :  { %20 = vsyncadd [#allocation3], 768  ;;  %s25_s11 = sshll.u32 %s677_s0, 4  ;;  %s502_s12 = smov [#allocation2]   ;;  %s26_s11 = int_to_ptr.hbm [resolvable:$true] %s25_s11 }
   0x4   :  { %s27_s13 = sshll.u32 %s502_s12, 4  ;;  %s503_s14 = smov 128   ;;  %s28_s13 = int_to_ptr.vmem [resolvable:$true] %s27_s13 }
   0x5   :  { %s504_s15 = smov 8  }
   0x6   :  { %33 = dma.hbm_to_vmem [thread:$0]  %s26_s11, 256, %s28_s13, [#allocation3], %s503_s14, %s503_s14, %s504_s15  }
   0x7   :  { %44 = vsyncadd [#allocation6], 768  ;;  %s49_s18 = sshll.u32 %s678_s1, 4  ;;  %s505_s19 = smov [#allocation5]   ;;  %s50_s18 = int_to_ptr.hbm [resolvable:$true] %s49_s18 }
   0x8   :  { %s51_s20 = sshll.u32 %s505_s19, 4  ;;  %s52_s20 = int_to_ptr.vmem [resolvable:$true] %s51_s20 }
   0x9   :  { %57 = dma.hbm_to_vmem [thread:$0]  %s50_s18, 256, %s52_s20, [#allocation6], %s503_s14, %s503_s14, %s504_s15  }
   0xa   :  { %496 = dma.done.wait [#allocation3], 1024  }
   0xb   :  { %497 = vsyncadd [#allocation3], 4294966272 }
   0xc   :  { %498 = dma.done.wait [#allocation6], 1024  }
   0xd   :  { %499 = vsyncadd [#allocation6], 4294966272  ;;  %v278_v0 = vlaneseq  ;;  %v90_v5 = vld [vmem:[#allocation5] sm:$0xff]  ;;  %v91_v9 = vld [vmem:[#allocation5 + $0x8] sm:$0xff]  ;;  %s506_s0 = smov [#allocation7]   ;;  %s368_s23 = sshll.u32 %s679_s2, 4  ;;  %s369_s23 = int_to_ptr.hbm [resolvable:$true] %s368_s23 }
   0xe   :  { %v98_v6 = vld [vmem:[#allocation2] sm:$0xff]  ;;  %v99_v12 = vld [vmem:[#allocation2 + $0x8] sm:$0xff]  ;;  %v92_v13 = vld [vmem:[#allocation5 + $0x10] sm:$0xff]  ;;  %s366_s1 = sshll.u32 %s506_s0, 4  ;;  %s367_s1 = int_to_ptr.vmem [resolvable:$true] %s366_s1 }
   0xf   :  { %v534_v1 = vshrl.u32 %v278_v0, 7  ;;  %v539_v7 = vand.u32 127, %v278_v0  ;;  %v543_v11 = vsub.f32 %v90_v5, %v98_v6  ;;  %v100_v14 = vld [vmem:[#allocation2 + $0x10] sm:$0xff]  ;;  %v545_v15 = vsub.f32 %v91_v9, %v99_v12  ;;  %v93_v18 = vld [vmem:[#allocation5 + $0x18] sm:$0xff]  ;;  %v94_v20 = vld [vmem:[#allocation5 + $0x20] sm:$0xff] }
  0x10   :  { %v547_v17 = vsub.f32 %v92_v13, %v100_v14  ;;  %v101_v19 = vld [vmem:[#allocation2 + $0x18] sm:$0xff]  ;;  %v102_v24 = vld [vmem:[#allocation2 + $0x20] sm:$0xff]  ;;  %v95_v32 = vld [vmem:[#allocation5 + $0x28] sm:$0xff] }
  0x11   :  { %v280_v2 = vadd.s32 8, %v534_v1  ;;  %v281_v3 = vadd.s32 16, %v534_v1  ;;  %v282_v4 = vadd.s32 24, %v534_v1  ;;  %v298_v8 = vmul.u32 128, %v534_v1  ;;  %v103_v33 = vld [vmem:[#allocation2 + $0x28] sm:$0xff]  ;;  %v96_v35 = vld [vmem:[#allocation5 + $0x30] sm:$0xff] }
  0x12   :  { %v283_v10 = vadd.s32 32, %v534_v1  ;;  %v122_v21 = vand.u32 2147483647, %v543_v11  ;;  %v123_v26 = vand.u32 2147483647, %v545_v15  ;;  %v555_v30 = vsub.f32 %v93_v18, %v101_v19  ;;  %v104_v40 = vld [vmem:[#allocation2 + $0x30] sm:$0xff] }
  0x13   :  { %v299_v16 = vmul.u32 128, %v280_v2  ;;  %v300_v22 = vmul.u32 128, %v281_v3  ;;  %v301_v23 = vmul.u32 128, %v282_v4  ;;  %v551_v25 = vadd.s32 %v298_v8, %v539_v7  ;;  %v97_v55 = vld [vmem:[#allocation5 + $0x38] sm:$0xff] }
  0x14   :  { %v124_v27 = vand.u32 2147483647, %v547_v17  ;;  %v302_v28 = vmul.u32 128, %v283_v10  ;;  %v130_v29 = vsub.f32 0.0, %v122_v21  ;;  %v557_v31 = vsub.f32 %v94_v20, %v102_v24  ;;  %v105_v59 = vld [vmem:[#allocation2 + $0x38] sm:$0xff] }
  0x15   :  { %v284_v34 = vadd.s32 40, %v534_v1  ;;  %v131_v36 = vsub.f32 0.0, %v123_v26  ;;  %v561_v37 = vadd.s32 %v299_v16, %v539_v7  ;;  %v563_v39 = vsub.f32 %v95_v32, %v103_v33 }
  0x16   :  { %v132_v38 = vsub.f32 0.0, %v124_v27  ;;  %v138_v41 = vmul.f32 1.442695, %v130_v29  ;;  %v566_v42 = vadd.s32 %v300_v22, %v539_v7  ;;  %v125_v43 = vand.u32 2147483647, %v555_v30 }
  0x17   :  { %v570_v44 = vadd.s32 %v301_v23, %v539_v7  ;;  %v140_v45 = vmul.f32 1.442695, %v131_v36  ;;  %v126_v47 = vand.u32 2147483647, %v557_v31  ;;  %v573_v48 = vsub.f32 %v96_v35, %v104_v40 }
  0x18   :  { %v142_v46 = vmul.f32 1.442695, %v132_v38  ;;  %392 = vpow2.f32 %v138_v41  ;;  %v133_v49 = vsub.f32 0.0, %v125_v43  ;;  %v576_v50 = vadd.s32 %v302_v28, %v539_v7 }
  0x19   :  { %v127_v51 = vand.u32 2147483647, %v563_v39  ;;  %v114_v52 = vmax.f32 %v543_v11, 0.0  ;;  %394 = vpow2.f32 %v140_v45  ;;  %v134_v53 = vsub.f32 0.0, %v126_v47 }
  0x1a   :  { %v303_v54 = vmul.u32 128, %v284_v34  ;;  %396 = vpow2.f32 %v142_v46  ;;  %v144_v56 = vmul.f32 1.442695, %v133_v49  ;;  %v128_v58 = vand.u32 2147483647, %v573_v48 }
  0x1b   :  { %v135_v57 = vsub.f32 0.0, %v127_v51  ;;  %v115_v60 = vmax.f32 %v545_v15, 0.0  ;;  %v116_v61 = vmax.f32 %v547_v17, 0.0  ;;  %v146_v62 = vmul.f32 1.442695, %v134_v53 }
  0x1c   :  { %v584_v63 = vadd.s32 48, %v534_v1  ;;  %v117_v0 = vmax.f32 %v555_v30, 0.0  ;;  %398 = vpow2.f32 %v144_v56  ;;  %v136_v3 = vsub.f32 0.0, %v128_v58 }
  0x1d   :  { %v148_v2 = vmul.f32 1.442695, %v135_v57  ;;  %v118_v4 = vmax.f32 %v557_v31, 0.0  ;;  %400 = vpow2.f32 %v146_v62  ;;  %v119_v5 = vmax.f32 %v563_v39, 0.0 }
  0x1e   :  { %v589_v6 = vsub.f32 %v97_v55, %v105_v59  ;;  %v393_v8 = vpop.eup %392  ;;  %v592_v9 = vadd.s32 %v303_v54, %v539_v7  ;;  %v120_v10 = vmax.f32 %v573_v48, 0.0  ;;  %v150_v12 = vmul.f32 1.442695, %v136_v3 }
  0x1f   :  { %402 = vpow2.f32 %v148_v2  ;;  %v395_v13 = vpop.eup %394  ;;  %v154_v14 = vadd.f32 1.0, %v393_v8  ;;  %v157_v16 = vmul.f32 -0.5, %v393_v8  ;;  %v160_v18 = vand.u32 2147483647, %v393_v8 }
  0x20   :  { %v304_v19 = vmul.u32 128, %v584_v63  ;;  %v397_v20 = vpop.eup %396  ;;  %v163_v21 = vadd.f32 1.0, %v395_v13  ;;  %v166_v22 = vmul.f32 -0.5, %v395_v13  ;;  %v169_v23 = vand.u32 2147483647, %v395_v13 }
  0x21   :  { %404 = vpow2.f32 %v150_v12  ;;  %v158_v24 = vadd.f32 1.0, %v157_v16  ;;  %v172_v26 = vadd.f32 1.0, %v397_v20  ;;  %v129_v27 = vand.u32 2147483647, %v589_v6 }
  0x22   :  { %406 = vlog2.f32 %v154_v14  ;;  %v399_v28 = vpop.eup %398  ;;  %vm597_vm0 = vcmp.lt.f32.partialorder %v160_v18, 0.0004427343  ;;  %vm314_vm1 = vcmp.lt.s32.totalorder %v551_v25, 2048  ;;  %v167_v32 = vadd.f32 1.0, %v166_v22 }
  0x23   :  { %408 = vlog2.f32 %v163_v21  ;;  %v175_v33 = vmul.f32 -0.5, %v397_v20  ;;  %v401_v34 = vpop.eup %400  ;;  %vm602_vm2 = vcmp.lt.f32.partialorder %v169_v23, 0.0004427343  ;;  %vm315_vm3 = vcmp.lt.s32.totalorder %v561_v37, 2048 }
  0x24   :  { %410 = vlog2.f32 %v172_v26  ;;  %v178_v36 = vand.u32 2147483647, %v397_v20  ;;  %v181_v38 = vadd.f32 1.0, %v399_v28  ;;  %v159_v41 = vmul.f32 %v393_v8, %v158_v24 }
  0x25   :  { %v403_v40 = vpop.eup %402  ;;  %v176_v43 = vadd.f32 1.0, %v175_v33  ;;  %vm316_vm4 = vcmp.lt.s32.totalorder %v566_v42, 2048  ;;  %v184_v45 = vmul.f32 -0.5, %v399_v28  ;;  %v187_v46 = vand.u32 2147483647, %v399_v28 }
  0x26   :  { %v168_v47 = vmul.f32 %v395_v13, %v167_v32  ;;  %412 = vlog2.f32 %v181_v38  ;;  %v190_v49 = vadd.f32 1.0, %v401_v34  ;;  %v193_v51 = vmul.f32 -0.5, %v401_v34 }
  0x27   :  { %v405_v53 = vpop.eup %404  ;;  %v177_v54 = vmul.f32 %v397_v20, %v176_v43  ;;  %vm608_vm5 = vcmp.lt.f32.partialorder %v178_v36, 0.0004427343  ;;  %v185_v56 = vadd.f32 1.0, %v184_v45  ;;  %vm317_vm6 = vcmp.lt.s32.totalorder %v570_v44, 2048 }
  0x28   :  { %v196_v57 = vand.u32 2147483647, %v401_v34  ;;  %v407_v58 = vpop.eup %406  ;;  %414 = vlog2.f32 %v190_v49  ;;  %v194_v59 = vadd.f32 1.0, %v193_v51  ;;  %v199_v62 = vadd.f32 1.0, %v403_v40 }
  0x29   :  { %v202_v2 = vmul.f32 -0.5, %v403_v40  ;;  %v409_v3 = vpop.eup %408  ;;  %v156_v8 = vmul.f32 0.6931472, %v407_v58  ;;  %v186_v12 = vmul.f32 %v399_v28, %v185_v56  ;;  %vm613_vm7 = vcmp.lt.f32.partialorder %v187_v46, 0.0004427343 }
  0x2a   :  { %vm617_vm8 = vcmp.lt.f32.partialorder %v196_v57, 0.0004427343  ;;  %vm318_vm9 = vcmp.lt.s32.totalorder %v576_v50, 2048  ;;  %v411_v16 = vpop.eup %410  ;;  %v165_v18 = vmul.f32 0.6931472, %v409_v3  ;;  %416 = vlog2.f32 %v199_v62 }
  0x2b   :  { %v203_v20 = vadd.f32 1.0, %v202_v2  ;;  %v205_v21 = vand.u32 2147483647, %v403_v40  ;;  %v162_v22 = vsel %vm597_vm0, %v159_v41, %v156_v8  ;;  %v174_v23 = vmul.f32 0.6931472, %v411_v16 }
  0x2c   :  { %v195_v24 = vmul.f32 %v401_v34, %v194_v59  ;;  %v208_v26 = vadd.f32 1.0, %v405_v53  ;;  %v413_v28 = vpop.eup %412  ;;  %v226_v32 = vadd.f32 %v162_v22, %v114_v52  ;;  %v171_v33 = vsel %vm602_vm2, %v168_v47, %v165_v18 }
  0x2d   :  { %v204_v36 = vmul.f32 %v403_v40, %v203_v20  ;;  %v211_v38 = vmul.f32 -0.5, %v405_v53  ;;  %v227_v43 = vadd.f32 %v171_v33, %v115_v60  ;;  %v180_v45 = vsel %vm608_vm5, %v177_v54, %v174_v23 }
  0x2e   :  { %v183_v29 = vmul.f32 0.6931472, %v413_v28  ;;  %418 = vlog2.f32 %v208_v26  ;;  %v415_v41 = vpop.eup %414  ;;  %v330_v34 = vsel %vm314_vm1, %v226_v32, 0.0  ;;  %v228_v11 = vadd.f32 %v180_v45, %v116_v61 }
  0x2f   :  { %v212_v52 = vadd.f32 1.0, %v211_v38  ;;  %v214_v35 = vand.u32 2147483647, %v405_v53  ;;  %v331_v40 = vsel %vm315_vm3, %v227_v43, 0.0  ;;  %v192_v60 = vmul.f32 0.6931472, %v415_v41 }
  0x30   :  { %v189_v15 = vsel %vm613_vm7, %v186_v12, %v183_v29  ;;  %v417_v46 = vpop.eup %416  ;;  %v332_v47 = vsel %vm316_vm4, %v228_v11, 0.0  ;;  %vm644_vm10 = vcmp.lt.f32.partialorder %v205_v21, 0.0004427343  ;;  %354 = vst [vmem:[#allocation7] sm:$0xff] %v330_v34  ;;  %v312_v61 = vadd.s32 %v304_v19, %v539_v7 }
  0x31   :  { %v229_v25 = vadd.f32 %v189_v15, %v117_v0  ;;  %v198_v17 = vsel %vm617_vm8, %v195_v24, %v192_v60  ;;  %v201_v37 = vmul.f32 0.6931472, %v417_v46  ;;  %355 = vst [vmem:[#allocation7 + $0x8] sm:$0xff] %v331_v40  ;;  %v213_v0 = vmul.f32 %v405_v53, %v212_v52 }
  0x32   :  { %v230_v30 = vadd.f32 %v198_v17, %v118_v4  ;;  %v137_v51 = vsub.f32 0.0, %v129_v27  ;;  %356 = vst [vmem:[#allocation7 + $0x10] sm:$0xff] %v332_v47  ;;  %vm319_vm11 = vcmp.lt.s32.totalorder %v592_v9, 2048  ;;  %vm215_vm12 = vcmp.lt.f32.partialorder %v214_v35, 0.0004427343 }
  0x33   :  { %v333_v42 = vsel %vm317_vm6, %v229_v25, 0.0  ;;  %v207_v55 = vsel %vm644_vm10, %v204_v36, %v201_v37  ;;  %vm320_vm13 = vcmp.lt.s32.totalorder %v312_v61, 2048  ;;  %v286_v50 = vadd.s32 56, %v534_v1 }
  0x34   :  { %v419_v54 = vpop.eup %418  ;;  %v334_v63 = vsel %vm318_vm9, %v230_v30, 0.0  ;;  %v231_v44 = vadd.f32 %v207_v55, %v119_v5  ;;  %v152_v4 = vmul.f32 1.442695, %v137_v51  ;;  %357 = vst [vmem:[#allocation7 + $0x18] sm:$0xff] %v333_v42  ;;  %v121_v8 = vmax.f32 %v589_v6, 0.0 }
  0x35   :  { %v210_v31 = vmul.f32 0.6931472, %v419_v54  ;;  %358 = vst [vmem:[#allocation7 + $0x20] sm:$0xff] %v334_v63  ;;  %v305_v58 = vmul.u32 128, %v286_v50 }
  0x36   :  { %v335_v19 = vsel %vm319_vm11, %v231_v44, 0.0  ;;  %420 = vpow2.f32 %v152_v4 }
  0x37   :  { %v216_v53 = vsel %vm215_vm12, %v213_v0, %v210_v31  ;;  %359 = vst [vmem:[#allocation7 + $0x28] sm:$0xff] %v335_v19  ;;  %v313_v2 = vadd.s32 %v305_v58, %v539_v7 }
  0x38   :  { %v232_v27 = vadd.f32 %v216_v53, %v120_v10 }
  0x39   :  { %vm321_vm15 = vcmp.lt.s32.totalorder %v313_v2, 2048 }
  0x3a   :  { %v336_v9 = vsel %vm320_vm13, %v232_v27, 0.0 }
  0x3b   :  { %360 = vst [vmem:[#allocation7 + $0x30] sm:$0xff] %v336_v9 }
  0x3c   :  { %v421_v56 = vpop.eup %420 }
  0x3d   :  { %v217_v57 = vadd.f32 1.0, %v421_v56  ;;  %v220_v39 = vmul.f32 -0.5, %v421_v56  ;;  %v223_v59 = vand.u32 2147483647, %v421_v56 }
  0x3f   :  { %422 = vlog2.f32 %v217_v57  ;;  %v221_v5 = vadd.f32 1.0, %v220_v39  ;;  %vm224_vm14 = vcmp.lt.f32.partialorder %v223_v59, 0.0004427343 }
  0x41   :  { %v222_v62 = vmul.f32 %v421_v56, %v221_v5 }
  0x45   :  { %v423_v3 = vpop.eup %422 }
  0x46   :  { %v219_v48 = vmul.f32 0.6931472, %v423_v3 }
  0x48   :  { %v225_v10 = vsel %vm224_vm14, %v222_v62, %v219_v48 }
  0x49   :  { %v233_v12 = vadd.f32 %v225_v10, %v121_v8 }
  0x4b   :  { %v337_v1 = vsel %vm321_vm15, %v233_v12, 0.0 }
  0x4c   :  { %361 = vst [vmem:[#allocation7 + $0x38] sm:$0xff] %v337_v1 }
  0x4d   :  { %374 = dma.vmem_to_hbm [thread:$0]  %s367_s1, 1024, %s369_s23, [#allocation4], %s503_s14, %s503_s14, %s504_s15  }
  0x4e   :  { %500 = dma.done.wait [#allocation4], 1024  }
  0x4f   :  { %501 = vsyncadd [#allocation4], 4294966272 }
  0x50   :  { %379 = vsyncpa [#allocation3], 1 }
  0x51   :  { %380 = vsyncpa [#allocation6], 1 }
  0x52   :  { %381 = vsyncpa [#allocation4], 1 }

</bundles_post_ra>
